<compile_context>
chip_gen: v7x
topology: tpu7x:2x2x1
jax: 0.10.0
libtpu: 0.0.40
codegen_flags: <defaults>
</compile_context>

<pallas_src>
import jax
import jax.numpy as jnp
from jax.experimental import pallas as pl
from jax.experimental.pallas import tpu as pltpu

BN_EPS = 1e-5
LANE = 128


def _round_up(x: int, m: int) -> int:
    return ((x + m - 1) // m) * m


def _make_fused_mlp_kernel(n_layers: int, compute_dtype):
    """Builds a kernel: x_ref, (w0, b0), ..., (w_{L-1}, b_{L-1}), o_ref."""

    def kernel(*refs):
        x_ref = refs[0]
        o_ref = refs[-1]
        # Cast f32 -> bf16 on the VPU inside the kernel (free slot) instead of a
        # separate wrapper-side XLA cast that would round-trip x through HBM.
        h = x_ref[...].astype(compute_dtype)
        for l in range(n_layers):
            w_ref = refs[1 + 2 * l]
            b_ref = refs[2 + 2 * l]
            # MXU matmul with f32 accumulation.
            acc = jnp.dot(h, w_ref[...], preferred_element_type=jnp.float32)
            # Bias + ReLU stay in f32 (v5e-safe: no bf16 VPU needed). BN is already
            # folded into w/b; dropout (eval) = identity.
            acc = jnp.maximum(acc + b_ref[...], 0.0)
            if l < n_layers - 1:
                h = acc.astype(compute_dtype)
            else:
                o_ref[...] = acc.astype(o_ref.dtype)

    return kernel


def fold_and_pack_params(params, compute_dtype=jnp.bfloat16, hidden_pad=LANE):
    """Fold eval-mode BN into Linear, transpose, pad hidden dims, cast — once, outside jit.

    params: list of (weight(f_out,f_in) f32, bias(f_out,) f32, bn or None) where
            bn = (gamma, beta, running_mean, running_var).
    Returns: list of (w_t(f_in_pad, f_out_pad) compute_dtype, bias(1, f_out_pad) f32).

    Hidden-layer f_out is zero-padded to a multiple of `hidden_pad` (lane-dense
    matmuls / elementwise ops); the padded columns have zero weights and zero bias,
    so their activations are exactly 0 and the next layer's zero-padded rows keep
    the math identical.  The LAST layer's f_out is left unpadded (don't inflate the
    HBM output bytes); the first layer's f_in is left unpadded (x stays 32-wide in HBM).
    """
    n_layers = len(params)
    packed = []
    prev_out_pad = None
    for idx, (weight, bias, bn) in enumerate(params):
        w = weight.astype(jnp.float32)          # (f_out, f_in)
        b = bias.astype(jnp.float32)            # (f_out,)
        if bn is not None:
            gamma, beta, mean, var = (p.astype(jnp.float32) for p in bn)
            scale = gamma * jax.lax.rsqrt(var + BN_EPS)
            w = w * scale[:, None]
            b = (b - mean) * scale + beta
        f_out, f_in = w.shape
        w_t = w.T                               # (f_in, f_out), lane-dense layout
        in_pad = f_in if idx == 0 else prev_out_pad
        out_pad = f_out if idx == n_layers - 1 else _round_up(f_out, hidden_pad)
        w_t = jnp.pad(w_t, ((0, in_pad - f_in), (0, out_pad - f_out)))
        b = jnp.pad(b, (0, out_pad - f_out))
        packed.append((jnp.asarray(w_t, dtype=compute_dtype),
                       b.reshape(1, -1).astype(jnp.float32)))
        prev_out_pad = out_pad
    return packed


def perceptron_forward(x, packed_params, *, batch_tile=8192, out_dtype=jnp.float32,
                       dimension_semantics=("parallel",)):
    """Fused forward pass. x: (B, input_dim) f32. Returns (B, f_out_last) out_dtype.

    On v7x pass dimension_semantics=(pltpu.CORE_PARALLEL,) so the batch grid axis
    is split across the two TensorCores.
    """
    B, f_in = x.shape
    n_layers = len(packed_params)
    assert packed_params[0][0].shape[0] == f_in, "first-layer f_in mismatch"
    f_out_last = packed_params[-1][0].shape[1]
    compute_dtype = packed_params[0][0].dtype

    # Batch tile: multiple of 16 (bf16 sublane packing), capped by batch_tile.
    # At TB=8192 each step moves >1 MiB so the fixed per-step cost is amortized,
    # and double-buffered I/O + f32/bf16 temporaries stay ~10 MiB of VMEM.
    TB = min(batch_tile, _round_up(B, 16))
    grid = (pl.cdiv(B, TB),)   # ragged last block: no wrapper-side pad, no output slice

    in_specs = [pl.BlockSpec((TB, f_in), lambda i: (i, 0))]
    flat_args = [x]
    for w_t, b2 in packed_params:
        fi, fo = w_t.shape
        # Constant index_map: weights/biases stay VMEM-resident across grid steps.
        in_specs.append(pl.BlockSpec((fi, fo), lambda i: (0, 0)))
        in_specs.append(pl.BlockSpec((1, fo), lambda i: (0, 0)))
        flat_args += [w_t, b2]

    out_specs = pl.BlockSpec((TB, f_out_last), lambda i: (i, 0))
    out_shape = jax.ShapeDtypeStruct((B, f_out_last), out_dtype)

    flops = 2 * B * sum(int(w.shape[0]) * int(w.shape[1]) for (w, _) in packed_params)
    bytes_accessed = (
        x.size * x.dtype.itemsize
        + sum(w.size * w.dtype.itemsize + b.size * b.dtype.itemsize
              for (w, b) in packed_params)
        + B * f_out_last * jnp.dtype(out_dtype).itemsize
    )

    return pl.pallas_call(
        _make_fused_mlp_kernel(n_layers, compute_dtype),
        out_shape=out_shape,
        grid=grid,
        in_specs=in_specs,
        out_specs=out_specs,
        compiler_params=pltpu.CompilerParams(
            dimension_semantics=tuple(dimension_semantics)),
        cost_estimate=pl.CostEstimate(
            flops=flops, transcendentals=0, bytes_accessed=bytes_accessed),
    )(*flat_args)


def init_perceptron_params(key, input_dim, layer_dims, layer_bns):
    """Deterministic parameter init matching nn.Linear / nn.BatchNorm1d shapes."""
    dims = [input_dim] + list(layer_dims)
    params = []
    for i, (f_in, f_out) in enumerate(zip(dims[:-1], dims[1:])):
        key, kw, kb = jax.random.split(key, 3)
        bound = 1.0 / jnp.sqrt(f_in)
        weight = jax.random.uniform(kw, (f_out, f_in), jnp.float32, -bound, bound)
        bias = jax.random.uniform(kb, (f_out,), jnp.float32, -bound, bound)
        if layer_bns[i]:
            bn = (jnp.ones((f_out,), jnp.float32),    # gamma
                  jnp.zeros((f_out,), jnp.float32),   # beta
                  jnp.zeros((f_out,), jnp.float32),   # running_mean
                  jnp.ones((f_out,), jnp.float32))    # running_var
        else:
            bn = None
        params.append((weight, bias, bn))
    return params


def reference_forward(x, params):
    """Pure-JAX f32 reference (eval-mode PyTorch semantics)."""
    out = x
    for weight, bias, bn in params:
        out = out @ weight.T + bias
        if bn is not None:
            gamma, beta, mean, var = bn
            out = (out - mean) * jax.lax.rsqrt(var + BN_EPS) * gamma + beta
        out = jnp.maximum(out, 0.0)
    return out


if __name__ == "__main__":
    # Config consistent with PerceptronNet:
    #   input_dim=32, layer_dims=[64, 32, 16], activations=ReLU,
    #   bns=[True, True, False], dropout_prob=0.0  (eval mode)
    input_dim = 32
    layer_dims = [64, 32, 16]
    layer_bns = [True, True, False]
    batch = 8

    key = jax.random.PRNGKey(0)
    key, kx = jax.random.split(key)
    x = jax.random.normal(kx, (batch, input_dim), jnp.float32)

    params = init_perceptron_params(key, input_dim, layer_dims, layer_bns)
    packed = fold_and_pack_params(params, compute_dtype=jnp.bfloat16)

    fwd = jax.jit(lambda xx: perceptron_forward(xx, packed))
    out = jax.block_until_ready(fwd(x))
    assert out.shape == (batch, layer_dims[-1]), out.shape
    assert bool(jnp.all(out >= 0.0))            # ReLU output is non-negative
    ref = reference_forward(x, params)
    max_err = float(jnp.max(jnp.abs(out - ref)))
    assert max_err < 5e-2, f"max abs error vs f32 reference too large: {max_err}"

    # Multi-step grid with a ragged last block (B not a multiple of the tile).
    x2 = jax.random.normal(jax.random.PRNGKey(1), (300, input_dim), jnp.float32)
    out2 = jax.block_until_ready(
        jax.jit(lambda xx: perceptron_forward(xx, packed, batch_tile=128))(x2))
    assert out2.shape == (300, layer_dims[-1]), out2.shape
    ref2 = reference_forward(x2, params)
    max_err2 = float(jnp.max(jnp.abs(out2 - ref2)))
    assert max_err2 < 5e-2, f"ragged-grid max abs error too large: {max_err2}"

    # bf16-output path (halves output HBM bytes; tolerance already absorbs it).
    out3 = jax.block_until_ready(
        jax.jit(lambda xx: perceptron_forward(xx, packed, out_dtype=jnp.bfloat16))(x))
    max_err3 = float(jnp.max(jnp.abs(out3.astype(jnp.float32) - ref)))
    assert max_err3 < 5e-2, f"bf16-output max abs error too large: {max_err3}"

    print("KERNEL_OK")
</pallas_src>

<mosaic_0001>
module attributes {stable_mosaic.version = 11 : i64} {
  func.func @kernel(%arg0: i32, %arg1: memref<16x32xf32, #tpu.memory_space<vmem>>, %arg2: memref<32x128xbf16, #tpu.memory_space<vmem>>, %arg3: memref<1x128xf32, #tpu.memory_space<vmem>>, %arg4: memref<128x128xbf16, #tpu.memory_space<vmem>>, %arg5: memref<1x128xf32, #tpu.memory_space<vmem>>, %arg6: memref<128x16xbf16, #tpu.memory_space<vmem>>, %arg7: memref<1x16xf32, #tpu.memory_space<vmem>>, %arg8: memref<16x16xf32, #tpu.memory_space<vmem>>) attributes {dimension_semantics = [#tpu.dimension_semantics<parallel>], iteration_bounds = array<i64: 1>, scalar_prefetch = 0 : i64, scratch_operands = 0 : i64, tpu.core_type = #tpu.core_type<tc>, window_params = [{transform_indices = @transform_0, window_bounds = array<i64: 16, 32>}, {pipeline_mode = #tpu.pipeline_mode<synchronous>, transform_indices = @transform_1, window_bounds = array<i64: 32, 128>}, {pipeline_mode = #tpu.pipeline_mode<synchronous>, transform_indices = @transform_2, window_bounds = array<i64: 1, 128>}, {pipeline_mode = #tpu.pipeline_mode<synchronous>, transform_indices = @transform_3, window_bounds = array<i64: 128, 128>}, {pipeline_mode = #tpu.pipeline_mode<synchronous>, transform_indices = @transform_4, window_bounds = array<i64: 1, 128>}, {pipeline_mode = #tpu.pipeline_mode<synchronous>, transform_indices = @transform_5, window_bounds = array<i64: 128, 16>}, {pipeline_mode = #tpu.pipeline_mode<synchronous>, transform_indices = @transform_6, window_bounds = array<i64: 1, 16>}, {transform_indices = @transform_7, window_bounds = array<i64: 16, 16>}]} {
    %c0 = arith.constant 0 : index
    %c0_0 = arith.constant 0 : index
    %0 = vector.load %arg1[%c0, %c0_0] : memref<16x32xf32, #tpu.memory_space<vmem>>, vector<16x32xf32>
    %1 = arith.truncf %0 : vector<16x32xf32> to vector<16x32xbf16>
    %c0_1 = arith.constant 0 : index
    %c0_2 = arith.constant 0 : index
    %2 = vector.load %arg2[%c0_1, %c0_2] : memref<32x128xbf16, #tpu.memory_space<vmem>>, vector<32x128xbf16>
    %cst = arith.constant dense<0.000000e+00> : vector<16x128xf32>
    %3 = tpu.matmul %1, %2, %cst {dimension_numbers = #tpu.dot_dimension_numbers<[1], [0], [0], [1], [0, 0, 1, 1], [], []>} : vector<16x32xbf16>, vector<32x128xbf16>, vector<16x128xf32> -> vector<16x128xf32>
    %c0_3 = arith.constant 0 : index
    %c0_4 = arith.constant 0 : index
    %4 = vector.load %arg3[%c0_3, %c0_4] : memref<1x128xf32, #tpu.memory_space<vmem>>, vector<1x128xf32>
    %5 = vector.broadcast %4 : vector<1x128xf32> to vector<16x128xf32>
    %6 = arith.addf %3, %5 : vector<16x128xf32>
    %cst_5 = arith.constant 0.000000e+00 : f32
    %7 = vector.broadcast %cst_5 : f32 to vector<16x128xf32>
    %8 = arith.maximumf %6, %7 : vector<16x128xf32>
    %9 = arith.truncf %8 : vector<16x128xf32> to vector<16x128xbf16>
    %c0_6 = arith.constant 0 : index
    %c0_7 = arith.constant 0 : index
    %10 = vector.load %arg4[%c0_6, %c0_7] : memref<128x128xbf16, #tpu.memory_space<vmem>>, vector<128x128xbf16>
    %cst_8 = arith.constant dense<0.000000e+00> : vector<16x128xf32>
    %11 = tpu.matmul %9, %10, %cst_8 {dimension_numbers = #tpu.dot_dimension_numbers<[1], [0], [0], [1], [0, 0, 1, 1], [], []>} : vector<16x128xbf16>, vector<128x128xbf16>, vector<16x128xf32> -> vector<16x128xf32>
    %c0_9 = arith.constant 0 : index
    %c0_10 = arith.constant 0 : index
    %12 = vector.load %arg5[%c0_9, %c0_10] : memref<1x128xf32, #tpu.memory_space<vmem>>, vector<1x128xf32>
    %13 = vector.broadcast %12 : vector<1x128xf32> to vector<16x128xf32>
    %14 = arith.addf %11, %13 : vector<16x128xf32>
    %cst_11 = arith.constant 0.000000e+00 : f32
    %15 = vector.broadcast %cst_11 : f32 to vector<16x128xf32>
    %16 = arith.maximumf %14, %15 : vector<16x128xf32>
    %17 = arith.truncf %16 : vector<16x128xf32> to vector<16x128xbf16>
    %c0_12 = arith.constant 0 : index
    %c0_13 = arith.constant 0 : index
    %18 = vector.load %arg6[%c0_12, %c0_13] : memref<128x16xbf16, #tpu.memory_space<vmem>>, vector<128x16xbf16>
    %cst_14 = arith.constant dense<0.000000e+00> : vector<16x16xf32>
    %19 = tpu.matmul %17, %18, %cst_14 {dimension_numbers = #tpu.dot_dimension_numbers<[1], [0], [0], [1], [0, 0, 1, 1], [], []>} : vector<16x128xbf16>, vector<128x16xbf16>, vector<16x16xf32> -> vector<16x16xf32>
    %c0_15 = arith.constant 0 : index
    %c0_16 = arith.constant 0 : index
    %20 = vector.load %arg7[%c0_15, %c0_16] : memref<1x16xf32, #tpu.memory_space<vmem>>, vector<1x16xf32>
    %21 = vector.broadcast %20 : vector<1x16xf32> to vector<16x16xf32>
    %22 = arith.addf %19, %21 : vector<16x16xf32>
    %cst_17 = arith.constant 0.000000e+00 : f32
    %23 = vector.broadcast %cst_17 : f32 to vector<16x16xf32>
    %24 = arith.maximumf %22, %23 : vector<16x16xf32>
    %c0_18 = arith.constant 0 : index
    %c0_19 = arith.constant 0 : index
    %25 = vector.load %arg8[%c0_18, %c0_19] : memref<16x16xf32, #tpu.memory_space<vmem>>, vector<16x16xf32>
    tpu.vector_store %arg8[%c0_18, %c0_19], %24 {strides = array<i32>} : memref<16x16xf32, #tpu.memory_space<vmem>>, vector<16x16xf32>,
    return
  }
  func.func @transform_0(%arg0: i32) -> (i32, i32) {
    %c0_i32 = arith.constant 0 : i32
    %c0_i32_0 = arith.constant 0 : i32
    return %arg0, %c0_i32 : i32, i32
  }
  func.func @transform_1(%arg0: i32) -> (i32, i32) {
    %c0_i32 = arith.constant 0 : i32
    %c0_i32_0 = arith.constant 0 : i32
    %c0_i32_1 = arith.constant 0 : i32
    return %c0_i32, %c0_i32_0 : i32, i32
  }
  func.func @transform_2(%arg0: i32) -> (i32, i32) {
    %c0_i32 = arith.constant 0 : i32
    %c0_i32_0 = arith.constant 0 : i32
    %c0_i32_1 = arith.constant 0 : i32
    return %c0_i32, %c0_i32_0 : i32, i32
  }
  func.func @transform_3(%arg0: i32) -> (i32, i32) {
    %c0_i32 = arith.constant 0 : i32
    %c0_i32_0 = arith.constant 0 : i32
    %c0_i32_1 = arith.constant 0 : i32
    return %c0_i32, %c0_i32_0 : i32, i32
  }
  func.func @transform_4(%arg0: i32) -> (i32, i32) {
    %c0_i32 = arith.constant 0 : i32
    %c0_i32_0 = arith.constant 0 : i32
    %c0_i32_1 = arith.constant 0 : i32
    return %c0_i32, %c0_i32_0 : i32, i32
  }
  func.func @transform_5(%arg0: i32) -> (i32, i32) {
    %c0_i32 = arith.constant 0 : i32
    %c0_i32_0 = arith.constant 0 : i32
    %c0_i32_1 = arith.constant 0 : i32
    return %c0_i32, %c0_i32_0 : i32, i32
  }
  func.func @transform_6(%arg0: i32) -> (i32, i32) {
    %c0_i32 = arith.constant 0 : i32
    %c0_i32_0 = arith.constant 0 : i32
    %c0_i32_1 = arith.constant 0 : i32
    return %c0_i32, %c0_i32_0 : i32, i32
  }
  func.func @transform_7(%arg0: i32) -> (i32, i32) {
    %c0_i32 = arith.constant 0 : i32
    %c0_i32_0 = arith.constant 0 : i32
    return %arg0, %c0_i32 : i32, i32
  }
}

</mosaic_0001>

<bundles_post_ra>
// kernel: _lambda_.1
= control target key start
LH: loop header
LB: loop body
LE: loop exit
PB: predicated region body
PF: predicated region fallthrough
CT: control target
= control target key end

     0   :  { %12 = vsyncpa [#allocation3], 0  ;;  %s750_s0 = inlined_call_operand.vmem [shape: f32[8,32], index: 0, kind: input, shape index: {}]   ;;  %s751_s1 = inlined_call_operand.vmem [shape: bf16[32,128], index: 1, kind: input, shape index: {}]   ;;  %s752_s2 = inlined_call_operand.hbm [shape: f32[1,128], index: 2, kind: input, shape index: {}]   ;;  %s753_s3 = inlined_call_operand.hbm [shape: bf16[128,128], index: 3, kind: input, shape index: {}]   ;;  %s754_s4 = inlined_call_operand.vmem [shape: f32[1,128], index: 4, kind: input, shape index: {}]   ;;  %s755_s5 = inlined_call_operand.hbm [shape: bf16[128,16], index: 5, kind: input, shape index: {}]   ;;  %s756_s6 = inlined_call_operand.vmem [shape: f32[1,16], index: 6, kind: input, shape index: {}]   ;;  %s757_s7 = inlined_call_operand.hbm [shape: f32[8,16], index: 7, kind: output, shape index: {}]  }
   0x1   :  { %13 = vsyncpa [#allocation6], 0 }
   0x2   :  { %14 = vsyncpa [#allocation4], 0  ;;  %s604_s24 = smov [#allocation5]   ;;  %s510_s28 = scalar_lea.hbm %s753_s3, 1024 }
   0x3   :  { %s34_s25 = sshll.u32 %s604_s24, 4  ;;  %p511_p0 = scmp.ne.s32.totalorder %s753_s3, %s510_s28  ;;  %s35_s25 = int_to_ptr.vmem [resolvable:$true] %s34_s25 }
   0x4   :  { %p514_p1 = scmp.lt.u32.totalorder %s510_s28, %s753_s3 }
   0x6   :  { %p516_p2 = pnand %p514_p1, %p511_p0 }
   0x8   :  { %519 = shalt.err (!%p516_p2)
}
   0x9   :  { %s520_s10 = scalar_lea.vmem %s35_s25, 1024  ;;  %p525_p4 = scmp.lt.s32.totalorder %s35_s25, %s35_s25 }
   0xa   :  { %p521_p3 = scmp.ne.s32.totalorder %s35_s25, %s520_s10  ;;  %p526_p5 = scmp.lt.s32.totalorder %s520_s10, %s520_s10 }
   0xc   :  { %p527_p6 = por %p526_p5, %p525_p4 }
   0xe   :  { %p528_p7 = pnand %p527_p6, %p521_p3 }
  0x10   :  { %531 = shalt.err (!%p528_p7)
}
  0x11   :  { %s605_s11 = smov 64   ;;  %s606_s12 = smov 4  }
  0x12   :  { %40 = dma.hbm_to_vmem [thread:$0]  %s753_s3, 1024, %s35_s25, [#allocation6], %s605_s11, %s605_s11, %s606_s12  }
  0x13   :  { %s607_s15 = smov [#allocation2]   ;;  %s608_s17 = smov [#allocation7]  }
  0x14   :  { %s25_s16 = sshll.u32 %s607_s15, 4  ;;  %s48_s18 = sshll.u32 %s608_s17, 4  ;;  %s26_s16 = int_to_ptr.vmem [resolvable:$true] %s25_s16  ;;  %s49_s18 = int_to_ptr.vmem [resolvable:$true] %s48_s18 }
  0x15   :  { %s532_s21 = scalar_lea.hbm %s752_s2, 16 }
  0x16   :  { %p533_p8 = scmp.ne.s32.totalorder %s752_s2, %s532_s21  ;;  %p536_p9 = scmp.lt.u32.totalorder %s532_s21, %s752_s2 }
  0x18   :  { %p538_p10 = pnand %p536_p9, %p533_p8 }
  0x1a   :  { %541 = shalt.err (!%p538_p10)
}
  0x1b   :  { %s542_s3 = scalar_lea.vmem %s26_s16, 16  ;;  %s546_s25 = scalar_lea.vmem %s26_s16, 32 }
  0x1c   :  { %p543_p11 = scmp.ne.s32.totalorder %s26_s16, %s542_s3  ;;  %p547_p12 = scmp.lt.s32.totalorder %s26_s16, %s26_s16 }
  0x1d   :  { %p548_p13 = scmp.lt.s32.totalorder %s546_s25, %s542_s3 }
  0x1f   :  { %p549_p0 = por %p548_p13, %p547_p12 }
  0x21   :  { %p550_p1 = pnand %p549_p0, %p543_p11 }
  0x23   :  { %553 = shalt.err (!%p550_p1)
}
  0x24   :  { %28 = dma.hbm_to_vmem [thread:$0]  %s752_s2, 16, %s26_s16, [#allocation3]  }
  0x25   :  { %s554_s8 = scalar_lea.hbm %s755_s5, 1024 }
  0x26   :  { %p555_p2 = scmp.ne.s32.totalorder %s755_s5, %s554_s8  ;;  %p558_p3 = scmp.lt.u32.totalorder %s554_s8, %s755_s5 }
  0x28   :  { %p560_p4 = pnand %p558_p3, %p555_p2 }
  0x2a   :  { %563 = shalt.err (!%p560_p4)
}
  0x2b   :  { %s564_s15 = scalar_lea.vmem %s49_s18, 1024  ;;  %p569_p6 = scmp.lt.s32.totalorder %s49_s18, %s49_s18 }
  0x2c   :  { %p565_p5 = scmp.ne.s32.totalorder %s49_s18, %s564_s15  ;;  %p570_p7 = scmp.lt.s32.totalorder %s564_s15, %s564_s15 }
  0x2e   :  { %p571_p8 = por %p570_p7, %p569_p6 }
  0x30   :  { %p572_p9 = pnand %p571_p8, %p565_p5 }
  0x32   :  { %575 = shalt.err (!%p572_p9)
}
  0x33   :  { %54 = dma.hbm_to_vmem [thread:$0]  %s755_s5, 1024, %s49_s18, [#allocation6], %s605_s11, %s605_s11, %s606_s12  }
  0x34   :  { %598 = dma.done.wait [#allocation3], 16  }
  0x35   :  { %599 = vsyncadd [#allocation3], 4294967280 }
  0x36   :  { %600 = dma.done.wait [#allocation6], 2048  }
  0x37   :  { %601 = vsyncadd [#allocation6], 4294965248  ;;  %v609_v0 = vmov 0.0   ;;  %vm610_vm0 = vmmov 0   ;;  %v492_v1 = vld [vmem:[%s751_s1] sm:$0xff]   ;;  %v493_v2 = vld [vmem:[%s751_s1 + $0x8] sm:$0xff]  }
  0x38   :  { %434 = vmatprep.subr.bf16.mxu0 %v609_v0  ;;  %438 = vmatprep.mubr.msk.bf16.mxu0 %vm610_vm0, %v609_v0  ;;  %v67_v3 = vld [vmem:[%s750_s0] sm:$0xff]  ;;  %v68_v4 = vld [vmem:[%s750_s0 + $0x8] sm:$0xff]  ;;  %vm93_vm1 = vcmask 261120   ;;  %v496_v8 = vld [vmem:[#allocation5 + $0x10] sm:$0xff]   ;;  %vm370_vm2 = vcmask 130048  }
  0x39   :  { %442 = vmatprep.subr.bf16.mxu1 %v609_v0  ;;  %458 = vmatprep.mubr.msk.bf16.mxu1 %vm610_vm0, %v609_v0  ;;  %v494_v5 = vld [vmem:[#allocation5] sm:$0xff]   ;;  %v69_v6 = vpack.c.bf16 %v68_v4, %v67_v3  ;;  %v495_v7 = vld [vmem:[#allocation5 + $0x8] sm:$0xff]   ;;  %v497_v9 = vld [vmem:[#allocation5 + $0x18] sm:$0xff]  }
  0x3a   :  { %435 = vmatpush3.bf16.msra.mxu0 %v492_v1  ;;  %443 = vmatpush3.bf16.msra.mxu1 %v494_v5  ;;  %v498_v10 = vld [vmem:[#allocation5 + $0x20] sm:$0xff]   ;;  %v499_v11 = vld [vmem:[#allocation5 + $0x28] sm:$0xff]   ;;  %v500_v12 = vld [vmem:[#allocation5 + $0x30] sm:$0xff]  }
  0x3b   :  { %436 = vmatprep.subr.bf16.mxu0 %v609_v0  ;;  %444 = vmatprep.subr.bf16.mxu1 %v609_v0  ;;  %v501_v13 = vld [vmem:[#allocation5 + $0x38] sm:$0xff]   ;;  %v502_v14 = vld [vmem:[#allocation7] sm:$0xff]   ;;  %v503_v15 = vld [vmem:[#allocation7 + $0x8] sm:$0xff]  }
  0x3c   :  { %v504_v16 = vld [vmem:[#allocation7 + $0x10] sm:$0xff]   ;;  %v505_v17 = vld [vmem:[#allocation7 + $0x18] sm:$0xff]   ;;  %v506_v18 = vld [vmem:[#allocation7 + $0x20] sm:$0xff]  }
  0x3d   :  { %v507_v19 = vld [vmem:[#allocation7 + $0x28] sm:$0xff]   ;;  %v391_v20 = vld [vmem:[#allocation2] ss:$0 sm:$0xff]  ;;  %v508_v30 = vld [vmem:[#allocation7 + $0x30] sm:$0xff]  }
  0x3e   :  { %437 = vmatpush3.bf16.msra.mxu0 %v493_v2  ;;  %445 = vmatpush3.bf16.msra.mxu1 %v495_v7  ;;  %v509_v31 = vld [vmem:[#allocation7 + $0x38] sm:$0xff]  }
  0x3f   :  { %462 = vmatprep.subr.bf16.mxu0 %v609_v0  ;;  %446 = vmatprep.subr.bf16.mxu1 %v609_v0  ;;  %v395_v32 = vld [vmem:[%s754_s4] ss:$0 sm:$0xff] }
  0x40   :  { %v404_v42 = vld [vmem:[%s756_s6] ss:$0 sm:$0xff] }
  0x41   :  { %439 = vmatmul.mubr.msk.bf16.vlgmr.msra.gmra.mrb[0].mxu0 %vm93_vm1, %v69_v6 }
  0x42   :  { %478 = vmatprep.mubr.msk.bf16.mxu0 %vm610_vm0, %v609_v0  ;;  %447 = vmatpush3.bf16.msra.mxu1 %v496_v8 }
  0x43   :  { %448 = vmatprep.subr.bf16.mxu1 %v609_v0  ;;  %463 = vmatpush3.bf16.msra.mxu0 %v502_v14 }
  0x44   :  { %464 = vmatprep.subr.bf16.mxu0 %v609_v0 }
  0x46   :  { %449 = vmatpush3.bf16.msra.mxu1 %v497_v9 }
  0x47   :  { %450 = vmatprep.subr.bf16.mxu1 %v609_v0  ;;  %465 = vmatpush3.bf16.msra.mxu0 %v503_v15 }
  0x48   :  { %466 = vmatprep.subr.bf16.mxu0 %v609_v0 }
  0x4a   :  { %451 = vmatpush3.bf16.msra.mxu1 %v498_v10 }
  0x4b   :  { %452 = vmatprep.subr.bf16.mxu1 %v609_v0  ;;  %467 = vmatpush3.bf16.msra.mxu0 %v504_v16 }
  0x4c   :  { %468 = vmatprep.subr.bf16.mxu0 %v609_v0 }
  0x4e   :  { %453 = vmatpush3.bf16.msra.mxu1 %v499_v11 }
  0x4f   :  { %454 = vmatprep.subr.bf16.mxu1 %v609_v0  ;;  %469 = vmatpush3.bf16.msra.mxu0 %v505_v17 }
  0x50   :  { %470 = vmatprep.subr.bf16.mxu0 %v609_v0 }
  0x52   :  { %455 = vmatpush3.bf16.msra.mxu1 %v500_v12 }
  0x53   :  { %456 = vmatprep.subr.bf16.mxu1 %v609_v0  ;;  %471 = vmatpush3.bf16.msra.mxu0 %v506_v18 }
  0x54   :  { %472 = vmatprep.subr.bf16.mxu0 %v609_v0 }
  0x56   :  { %457 = vmatpush3.bf16.msra.mxu1 %v501_v13 }
  0x57   :  { %473 = vmatpush3.bf16.msra.mxu0 %v507_v19 }
  0x58   :  { %474 = vmatprep.subr.bf16.mxu0 %v609_v0 }
  0x5b   :  { %475 = vmatpush3.bf16.msra.mxu0 %v508_v30 }
  0x5c   :  { %476 = vmatprep.subr.bf16.mxu0 %v609_v0 }
  0x5f   :  { %477 = vmatpush3.bf16.msra.mxu0 %v509_v31 }
 0x114   :  { %v131_v21 = vpop.f32.mrb[0].mxu0 }
 0x115   :  { %v132_v22 = vadd.f32 %v391_v20, %v131_v21  ;;  %v440_v23 = vpop.f32.mrb[1].mxu0 }
 0x116   :  { %v134_v24 = vpop.f32.mrb[2].mxu0 }
 0x117   :  { %v135_v25 = vadd.f32 %v391_v20, %v134_v24  ;;  %v441_v26 = vpop.f32.mrb[3].mxu0  ;;  %v138_v27 = vmax.f32 %v132_v22, 0.0 }
 0x119   :  { %v139_v28 = vmax.f32 %v135_v25, 0.0 }
 0x11b   :  { %v140_v29 = vpack.c.bf16 %v139_v28, %v138_v27 }
 0x11d   :  { %459 = vmatmul.mubr.bf16.vlgmr.msra.gmra.mrb[0].mxu1 %v140_v29 }
 0x1f0   :  { %v246_v33 = vpop.f32.mrb[0].mxu1 }
 0x1f1   :  { %v247_v34 = vadd.f32 %v395_v32, %v246_v33  ;;  %v460_v35 = vpop.f32.mrb[1].mxu1 }
 0x1f2   :  { %v249_v36 = vpop.f32.mrb[2].mxu1 }
 0x1f3   :  { %v250_v37 = vadd.f32 %v395_v32, %v249_v36  ;;  %v461_v38 = vpop.f32.mrb[3].mxu1  ;;  %v253_v39 = vmax.f32 %v247_v34, 0.0 }
 0x1f5   :  { %v254_v40 = vmax.f32 %v250_v37, 0.0 }
 0x1f7   :  { %v255_v41 = vpack.c.bf16 %v254_v40, %v253_v39 }
 0x1f9   :  { %479 = vmatmul.mubr.bf16.vlgmr.msra.gmra.mrb[4].mxu0 %v255_v41 }
 0x2cc   :  { %v361_v43 = vpop.f32.mrb[4].mxu0 }
 0x2cd   :  { %v362_v44 = vadd.f32 %v404_v42, %v361_v43  ;;  %v480_v45 = vpop.f32.mrb[5].mxu0 }
 0x2ce   :  { %v364_v46 = vpop.f32.mrb[6].mxu0 }
 0x2cf   :  { %v368_v47 = vmax.f32 %v362_v44, 0.0  ;;  %v365_v48 = vadd.f32 %v404_v42, %v364_v46  ;;  %v481_v49 = vpop.f32.mrb[7].mxu0 }
 0x2d1   :  { %371 = vst.msk [vmem:[#allocation8] sm:$0xff] %vm370_vm2, %v368_v47  ;;  %v369_v50 = vmax.f32 %v365_v48, 0.0 }
 0x2d3   :  { %372 = vst.msk [vmem:[#allocation8 + $0x8] sm:$0xff] %vm370_vm2, %v369_v50 }
 0x2d4   :  { %377 = vsyncadd [#allocation4], 128  ;;  %s611_s4 = smov [#allocation8]  }
 0x2d5   :  { %s378_s24 = sshll.u32 %s611_s4, 4  ;;  %s379_s24 = int_to_ptr.vmem [resolvable:$true] %s378_s24 }
 0x2d6   :  { %s576_s26 = scalar_lea.vmem %s379_s24, 128  ;;  %s580_s3 = scalar_lea.vmem %s379_s24, 256 }
 0x2d7   :  { %p577_p10 = scmp.ne.s32.totalorder %s379_s24, %s576_s26  ;;  %p581_p11 = scmp.lt.s32.totalorder %s379_s24, %s379_s24 }
 0x2d8   :  { %p582_p12 = scmp.lt.s32.totalorder %s580_s3, %s576_s26 }
 0x2da   :  { %p583_p13 = por %p582_p12, %p581_p11 }
 0x2dc   :  { %p584_p0 = pnand %p583_p13, %p577_p10 }
 0x2de   :  { %587 = shalt.err (!%p584_p0)
}
 0x2df   :  { %s588_s27 = scalar_lea.hbm %s757_s7, 128 }
 0x2e0   :  { %p589_p1 = scmp.ne.s32.totalorder %s757_s7, %s588_s27  ;;  %p592_p2 = scmp.lt.u32.totalorder %s588_s27, %s757_s7 }
 0x2e2   :  { %p594_p3 = pnand %p592_p2, %p589_p1 }
 0x2e4   :  { %597 = shalt.err (!%p594_p3)
}
 0x2e5   :  { %s612_s9 = smov 128   ;;  %s613_s10 = smov 8  }
 0x2e6   :  { %384 = dma.vmem_to_hbm [thread:$0]  %s379_s24, 128, %s757_s7, [#allocation4], %s612_s9, %s612_s9, %s613_s10  }
 0x2e7   :  { %602 = dma.done.wait [#allocation4], 256  }
 0x2e8   :  { %603 = vsyncadd [#allocation4], 4294967040 }
 0x2e9   :  { %388 = vsyncpa [#allocation3], 1 }
 0x2ea   :  { %389 = vsyncpa [#allocation6], 1 }
 0x2eb   :  { %390 = vsyncpa [#allocation4], 1 }

</bundles_post_ra>
